<compile_context>
chip_gen: v5e
topology: v5e:2x2
jax: 0.10.0
libtpu: 0.0.40
codegen_flags: <defaults>
</compile_context>

<pallas_src>
import functools

import jax
import jax.numpy as jnp
from jax.experimental import pallas as pl
from jax.experimental.pallas import tpu as pltpu

_P_ROWS, _P_COLS = 64, 34  # packed parameter slab shape


def _round_up(n, m):
    return ((n + m - 1) // m) * m


def _cdiv(a, b):
    return (a + b - 1) // b


def pack_params(params):
    """Pack the four PyTorch-style (W (out,in), b (out,)) pairs into one
    (64, 34) f32 slab:
      rows  0:16, cols 0:2   W1      rows  0:16, col 32  b1
      rows 16:48, cols 0:16  W2      rows 16:48, col 32  b2
      rows 48:56, cols 0:32  W3      rows 48:56, col 32  b3
      rows 48:56, col 33     W4 (as a column)   row 56, col 33  b4
    """
    (w1, b1), (w2, b2), (w3, b3), (w4, b4) = params
    p = jnp.zeros((_P_ROWS, _P_COLS), jnp.float32)
    p = p.at[0:16, 0:2].set(w1.astype(jnp.float32))
    p = p.at[0:16, 32].set(b1.astype(jnp.float32))
    p = p.at[16:48, 0:16].set(w2.astype(jnp.float32))
    p = p.at[16:48, 32].set(b2.astype(jnp.float32))
    p = p.at[48:56, 0:32].set(w3.astype(jnp.float32))
    p = p.at[48:56, 32].set(b3.astype(jnp.float32))
    p = p.at[48:56, 33].set(w4.reshape(8).astype(jnp.float32))
    p = p.at[56, 33].set(b4.reshape(()).astype(jnp.float32))
    return p


def brain_kernel(x_ref, p_ref, o_ref):
    """One batch tile of the fused MLP.  Batch lives on lanes (last axis)."""
    x = x_ref[...].astype(jnp.float32)                    # (2, TB)

    # Static slices of the resident packed-parameter slab (tiny loads).
    w1 = p_ref[0:16, 0:2]                                 # (16, 2)
    b1 = p_ref[0:16, 32:33]                               # (16, 1)
    w2 = p_ref[16:48, 0:16]                               # (32, 16)
    b2 = p_ref[16:48, 32:33]                              # (32, 1)
    w3 = p_ref[48:56, 0:32]                               # (8, 32)
    b3 = p_ref[48:56, 32:33]                              # (8, 1)
    w4 = p_ref[48:56, 33:34]                              # (8, 1)
    b4 = p_ref[56:57, 33:34]                              # (1, 1)

    # Layer 1: Linear(2->16) + ReLU  (K=2 -> two VPU broadcast FMAs).
    h1 = w1[:, 0:1] * x[0:1, :] + w1[:, 1:2] * x[1:2, :] + b1
    h1 = jnp.maximum(h1, 0.0)                             # (16, TB)
    # dropout1: identity (eval mode).

    # Layer 2: Linear(16->32) + ReLU on the MXU (batch tile fills N).
    h2 = jnp.dot(w2, h1, preferred_element_type=jnp.float32)
    h2 = jnp.maximum(h2 + b2, 0.0)                        # (32, TB)

    # Layers 3 + ReLU + 4 fused on the VPU: with K=32, M=8 the MXU would fill
    # <2% of a 256x256 array; 32 broadcast FMAs over the (8, TB) tile plus a
    # sublane reduce are cheaper and skip an MRF pop + VMEM round trip of h3.
    h3 = w3[:, 0:1] * h2[0:1, :] + b3                     # (8, TB)
    for k in range(1, 32):
        h3 = h3 + w3[:, k:k + 1] * h2[k:k + 1, :]
    h3 = jnp.maximum(h3, 0.0)
    # dropout3: identity (eval mode).

    # Layer 4: Linear(8->1) -> sublane reduce, lane-dense (1, TB) output.
    out = jnp.sum(w4 * h3, axis=0, keepdims=True) + b4
    o_ref[...] = out.astype(o_ref.dtype)                  # (1, TB)


def brain_forward_t(xt, packed, *, tb=32768):
    """Fused MLP forward on a batch-on-lanes input.

    xt:     (2, B) array, features on sublanes, batch on lanes.  May be bf16
            (halves the dominant HBM stream on v6e/v7x); math is f32.
    packed: (64, 34) slab from pack_params().
    Returns (1, B) float32.
    """
    _, B = xt.shape

    # Batch tile: forced to a multiple of 128 lanes; large by default so the
    # ~0.35us/grid-step overhead is amortized; capped so medium batches still
    # produce >=2 blocks (v7x: 2 TensorCores share the "parallel" axis).
    tb = max(128, _round_up(int(tb), 128))
    tb_cap = _round_up(_cdiv(B, 2), 128) if B > 256 else _round_up(B, 128)
    tb_eff = max(128, min(tb, tb_cap))
    n_blocks = _cdiv(B, tb_eff)          # ragged last block handled by Pallas

    # Scoped-VMEM budget: f32 intermediates (16+32+8)*TB plus double-buffered
    # x / out blocks plus the parameter slab (v5e scoped default is 16 MiB;
    # v7x physical VMEM is 64 MiB, so cap there).
    in_bytes = 2 * tb_eff * xt.dtype.itemsize
    need = (56 * tb_eff * 4) + 2 * in_bytes + 2 * (tb_eff * 4) \
        + _P_ROWS * _P_COLS * 4
    vmem_limit = int(min(max(2 * need + (8 << 20), 32 << 20), 64 << 20))

    flops_per_sample = 2 * (2 * 16 + 16 * 32 + 32 * 8 + 8 * 1)   # 1616
    cost = pl.CostEstimate(
        flops=flops_per_sample * B,
        transcendentals=0,
        bytes_accessed=(2 * xt.dtype.itemsize + 4) * B + _P_ROWS * _P_COLS * 4)

    return pl.pallas_call(
        brain_kernel,
        out_shape=jax.ShapeDtypeStruct((1, B), jnp.float32),
        grid=(n_blocks,),
        in_specs=[
            pl.BlockSpec((2, tb_eff), lambda i: (0, i)),          # x: batch tile
            pl.BlockSpec((_P_ROWS, _P_COLS), lambda i: (0, 0)),   # params resident
        ],
        out_specs=pl.BlockSpec((1, tb_eff), lambda i: (0, i)),
        compiler_params=pltpu.CompilerParams(
            dimension_semantics=("parallel",),
            vmem_limit_bytes=vmem_limit),
        cost_estimate=cost,
    )(xt, packed)


def brain_forward(x, packed, *, tb=32768):
    """PyTorch-layout wrapper: x is (B, 2), returns (B, 1).
    The transpose is a single XLA pass (no zero-pad materialization); callers
    that can lay the batch on the last axis should use brain_forward_t."""
    return brain_forward_t(jnp.transpose(x), packed, tb=tb).T


def init_params(key):
    """PyTorch-style init: W (out,in), b (out,), U(-1/sqrt(in), 1/sqrt(in))."""
    dims = [(2, 16), (16, 32), (32, 8), (8, 1)]
    params = []
    for fan_in, fan_out in dims:
        key, kw, kb = jax.random.split(key, 3)
        bound = 1.0 / (fan_in ** 0.5)
        w = jax.random.uniform(kw, (fan_out, fan_in), jnp.float32, -bound, bound)
        b = jax.random.uniform(kb, (fan_out,), jnp.float32, -bound, bound)
        params.append((w, b))
    return params


def brain_reference(x, params):
    """Pure-JAX eval-mode forward; dots at 'highest' precision (exact f32)."""
    dot = functools.partial(jnp.dot, precision=jax.lax.Precision.HIGHEST)
    (w1, b1), (w2, b2), (w3, b3), (w4, b4) = params
    h = jnp.maximum(dot(x, w1.T) + b1, 0.0)
    h = jnp.maximum(dot(h, w2.T) + b2, 0.0)
    h = jnp.maximum(dot(h, w3.T) + b3, 0.0)
    return dot(h, w4.T) + b4


if __name__ == "__main__":
    key = jax.random.PRNGKey(0)
    key, kx = jax.random.split(key)
    params = init_params(key)
    packed = pack_params(params)

    fwd = jax.jit(brain_forward, static_argnames=("tb",))

    # Tolerance note: layers 1/3/4 are exact f32 VPU math; only the layer-2
    # MXU dot runs at default matmul precision (possibly a bf16 pass), so a
    # few-1e-3 deviation from the 'highest'-precision reference is possible.
    ATOL = RTOL = 2e-2

    # Case 1: small ragged batch -> tb_eff=256, 2 grid blocks, ragged tail.
    B1 = 300
    x1 = jax.random.normal(kx, (B1, 2), jnp.float32)
    out1 = jax.block_until_ready(fwd(x1, packed))
    ref1 = brain_reference(x1, params)
    assert out1.shape == (B1, 1), out1.shape
    assert jnp.allclose(out1, ref1, atol=ATOL, rtol=RTOL)

    # Case 2: non-128-multiple user tb (1000 -> rounded to 1024), 2 full blocks.
    B2 = 2048
    key, kx2 = jax.random.split(key)
    x2 = jax.random.normal(kx2, (B2, 2), jnp.float32)
    out2 = jax.block_until_ready(fwd(x2, packed, tb=1000))
    ref2 = brain_reference(x2, params)
    assert out2.shape == (B2, 1), out2.shape
    assert jnp.allclose(out2, ref2, atol=ATOL, rtol=RTOL)

    print("KERNEL_OK")
</pallas_src>

<mosaic_0001>
module attributes {stable_mosaic.version = 11 : i64} {
  func.func @brain_kernel(%arg0: i32, %arg1: memref<2x256xf32, #tpu.memory_space<vmem>>, %arg2: memref<64x34xf32, #tpu.memory_space<vmem>>, %arg3: memref<1x256xf32, #tpu.memory_space<vmem>>) attributes {dimension_semantics = [#tpu.dimension_semantics<parallel>], iteration_bounds = array<i64: 2>, scalar_prefetch = 0 : i64, scratch_operands = 0 : i64, tpu.core_type = #tpu.core_type<tc>, window_params = [{transform_indices = @transform_0, window_bounds = array<i64: 2, 256>}, {pipeline_mode = #tpu.pipeline_mode<synchronous>, transform_indices = @transform_1, window_bounds = array<i64: 64, 34>}, {transform_indices = @transform_2, window_bounds = array<i64: 1, 256>}]} {
    %c0 = arith.constant 0 : index
    %c0_0 = arith.constant 0 : index
    %0 = vector.load %arg1[%c0, %c0_0] : memref<2x256xf32, #tpu.memory_space<vmem>>, vector<2x256xf32>
    %c0_1 = arith.constant 0 : index
    %c0_2 = arith.constant 0 : index
    %1 = vector.load %arg2[%c0_1, %c0_2] : memref<64x34xf32, #tpu.memory_space<vmem>>, vector<16x2xf32>
    %c0_3 = arith.constant 0 : index
    %c32 = arith.constant 32 : index
    %2 = vector.load %arg2[%c0_3, %c32] : memref<64x34xf32, #tpu.memory_space<vmem>>, vector<16x1xf32>
    %c16 = arith.constant 16 : index
    %c0_4 = arith.constant 0 : index
    %3 = vector.load %arg2[%c16, %c0_4] : memref<64x34xf32, #tpu.memory_space<vmem>>, vector<32x16xf32>
    %c16_5 = arith.constant 16 : index
    %c32_6 = arith.constant 32 : index
    %4 = vector.load %arg2[%c16_5, %c32_6] : memref<64x34xf32, #tpu.memory_space<vmem>>, vector<32x1xf32>
    %c48 = arith.constant 48 : index
    %c0_7 = arith.constant 0 : index
    %5 = vector.load %arg2[%c48, %c0_7] : memref<64x34xf32, #tpu.memory_space<vmem>>, vector<8x32xf32>
    %c48_8 = arith.constant 48 : index
    %c32_9 = arith.constant 32 : index
    %6 = vector.load %arg2[%c48_8, %c32_9] : memref<64x34xf32, #tpu.memory_space<vmem>>, vector<8x1xf32>
    %c48_10 = arith.constant 48 : index
    %c33 = arith.constant 33 : index
    %7 = vector.load %arg2[%c48_10, %c33] : memref<64x34xf32, #tpu.memory_space<vmem>>, vector<8x1xf32>
    %c56 = arith.constant 56 : index
    %c33_11 = arith.constant 33 : index
    %8 = vector.load %arg2[%c56, %c33_11] : memref<64x34xf32, #tpu.memory_space<vmem>>, vector<1x1xf32>
    %9 = vector.extract_strided_slice %1 {offsets = [0, 0], sizes = [16, 1], strides = [1, 1]} : vector<16x2xf32> to vector<16x1xf32>
    %10 = vector.extract_strided_slice %0 {offsets = [0, 0], sizes = [1, 256], strides = [1, 1]} : vector<2x256xf32> to vector<1x256xf32>
    %11 = vector.broadcast %9 : vector<16x1xf32> to vector<16x256xf32>
    %12 = vector.broadcast %10 : vector<1x256xf32> to vector<16x256xf32>
    %13 = arith.mulf %11, %12 : vector<16x256xf32>
    %14 = vector.extract_strided_slice %1 {offsets = [0, 1], sizes = [16, 1], strides = [1, 1]} : vector<16x2xf32> to vector<16x1xf32>
    %15 = vector.extract_strided_slice %0 {offsets = [1, 0], sizes = [1, 256], strides = [1, 1]} : vector<2x256xf32> to vector<1x256xf32>
    %16 = vector.broadcast %14 : vector<16x1xf32> to vector<16x256xf32>
    %17 = vector.broadcast %15 : vector<1x256xf32> to vector<16x256xf32>
    %18 = arith.mulf %16, %17 : vector<16x256xf32>
    %19 = arith.addf %13, %18 : vector<16x256xf32>
    %20 = vector.broadcast %2 : vector<16x1xf32> to vector<16x256xf32>
    %21 = arith.addf %19, %20 : vector<16x256xf32>
    %cst = arith.constant 0.000000e+00 : f32
    %22 = vector.broadcast %cst : f32 to vector<16x256xf32>
    %23 = arith.maximumf %21, %22 : vector<16x256xf32>
    %cst_12 = arith.constant dense<0.000000e+00> : vector<32x256xf32>
    %24 = tpu.matmul %3, %23, %cst_12 {dimension_numbers = #tpu.dot_dimension_numbers<[1], [0], [0], [1], [0, 0, 1, 1], [], []>} : vector<32x16xf32>, vector<16x256xf32>, vector<32x256xf32> -> vector<32x256xf32>
    %25 = vector.broadcast %4 : vector<32x1xf32> to vector<32x256xf32>
    %26 = arith.addf %24, %25 : vector<32x256xf32>
    %cst_13 = arith.constant 0.000000e+00 : f32
    %27 = vector.broadcast %cst_13 : f32 to vector<32x256xf32>
    %28 = arith.maximumf %26, %27 : vector<32x256xf32>
    %29 = vector.extract_strided_slice %5 {offsets = [0, 0], sizes = [8, 1], strides = [1, 1]} : vector<8x32xf32> to vector<8x1xf32>
    %30 = vector.extract_strided_slice %28 {offsets = [0, 0], sizes = [1, 256], strides = [1, 1]} : vector<32x256xf32> to vector<1x256xf32>
    %31 = vector.broadcast %29 : vector<8x1xf32> to vector<8x256xf32>
    %32 = vector.broadcast %30 : vector<1x256xf32> to vector<8x256xf32>
    %33 = arith.mulf %31, %32 : vector<8x256xf32>
    %34 = vector.broadcast %6 : vector<8x1xf32> to vector<8x256xf32>
    %35 = arith.addf %33, %34 : vector<8x256xf32>
    %36 = vector.extract_strided_slice %5 {offsets = [0, 1], sizes = [8, 1], strides = [1, 1]} : vector<8x32xf32> to vector<8x1xf32>
    %37 = vector.extract_strided_slice %28 {offsets = [1, 0], sizes = [1, 256], strides = [1, 1]} : vector<32x256xf32> to vector<1x256xf32>
    %38 = vector.broadcast %36 : vector<8x1xf32> to vector<8x256xf32>
    %39 = vector.broadcast %37 : vector<1x256xf32> to vector<8x256xf32>
    %40 = arith.mulf %38, %39 : vector<8x256xf32>
    %41 = arith.addf %35, %40 : vector<8x256xf32>
    %42 = vector.extract_strided_slice %5 {offsets = [0, 2], sizes = [8, 1], strides = [1, 1]} : vector<8x32xf32> to vector<8x1xf32>
    %43 = vector.extract_strided_slice %28 {offsets = [2, 0], sizes = [1, 256], strides = [1, 1]} : vector<32x256xf32> to vector<1x256xf32>
    %44 = vector.broadcast %42 : vector<8x1xf32> to vector<8x256xf32>
    %45 = vector.broadcast %43 : vector<1x256xf32> to vector<8x256xf32>
    %46 = arith.mulf %44, %45 : vector<8x256xf32>
    %47 = arith.addf %41, %46 : vector<8x256xf32>
    %48 = vector.extract_strided_slice %5 {offsets = [0, 3], sizes = [8, 1], strides = [1, 1]} : vector<8x32xf32> to vector<8x1xf32>
    %49 = vector.extract_strided_slice %28 {offsets = [3, 0], sizes = [1, 256], strides = [1, 1]} : vector<32x256xf32> to vector<1x256xf32>
    %50 = vector.broadcast %48 : vector<8x1xf32> to vector<8x256xf32>
    %51 = vector.broadcast %49 : vector<1x256xf32> to vector<8x256xf32>
    %52 = arith.mulf %50, %51 : vector<8x256xf32>
    %53 = arith.addf %47, %52 : vector<8x256xf32>
    %54 = vector.extract_strided_slice %5 {offsets = [0, 4], sizes = [8, 1], strides = [1, 1]} : vector<8x32xf32> to vector<8x1xf32>
    %55 = vector.extract_strided_slice %28 {offsets = [4, 0], sizes = [1, 256], strides = [1, 1]} : vector<32x256xf32> to vector<1x256xf32>
    %56 = vector.broadcast %54 : vector<8x1xf32> to vector<8x256xf32>
    %57 = vector.broadcast %55 : vector<1x256xf32> to vector<8x256xf32>
    %58 = arith.mulf %56, %57 : vector<8x256xf32>
    %59 = arith.addf %53, %58 : vector<8x256xf32>
    %60 = vector.extract_strided_slice %5 {offsets = [0, 5], sizes = [8, 1], strides = [1, 1]} : vector<8x32xf32> to vector<8x1xf32>
    %61 = vector.extract_strided_slice %28 {offsets = [5, 0], sizes = [1, 256], strides = [1, 1]} : vector<32x256xf32> to vector<1x256xf32>
    %62 = vector.broadcast %60 : vector<8x1xf32> to vector<8x256xf32>
    %63 = vector.broadcast %61 : vector<1x256xf32> to vector<8x256xf32>
    %64 = arith.mulf %62, %63 : vector<8x256xf32>
    %65 = arith.addf %59, %64 : vector<8x256xf32>
    %66 = vector.extract_strided_slice %5 {offsets = [0, 6], sizes = [8, 1], strides = [1, 1]} : vector<8x32xf32> to vector<8x1xf32>
    %67 = vector.extract_strided_slice %28 {offsets = [6, 0], sizes = [1, 256], strides = [1, 1]} : vector<32x256xf32> to vector<1x256xf32>
    %68 = vector.broadcast %66 : vector<8x1xf32> to vector<8x256xf32>
    %69 = vector.broadcast %67 : vector<1x256xf32> to vector<8x256xf32>
    %70 = arith.mulf %68, %69 : vector<8x256xf32>
    %71 = arith.addf %65, %70 : vector<8x256xf32>
    %72 = vector.extract_strided_slice %5 {offsets = [0, 7], sizes = [8, 1], strides = [1, 1]} : vector<8x32xf32> to vector<8x1xf32>
    %73 = vector.extract_strided_slice %28 {offsets = [7, 0], sizes = [1, 256], strides = [1, 1]} : vector<32x256xf32> to vector<1x256xf32>
    %74 = vector.broadcast %72 : vector<8x1xf32> to vector<8x256xf32>
    %75 = vector.broadcast %73 : vector<1x256xf32> to vector<8x256xf32>
    %76 = arith.mulf %74, %75 : vector<8x256xf32>
    %77 = arith.addf %71, %76 : vector<8x256xf32>
    %78 = vector.extract_strided_slice %5 {offsets = [0, 8], sizes = [8, 1], strides = [1, 1]} : vector<8x32xf32> to vector<8x1xf32>
    %79 = vector.extract_strided_slice %28 {offsets = [8, 0], sizes = [1, 256], strides = [1, 1]} : vector<32x256xf32> to vector<1x256xf32>
    %80 = vector.broadcast %78 : vector<8x1xf32> to vector<8x256xf32>
    %81 = vector.broadcast %79 : vector<1x256xf32> to vector<8x256xf32>
    %82 = arith.mulf %80, %81 : vector<8x256xf32>
    %83 = arith.addf %77, %82 : vector<8x256xf32>
    %84 = vector.extract_strided_slice %5 {offsets = [0, 9], sizes = [8, 1], strides = [1, 1]} : vector<8x32xf32> to vector<8x1xf32>
    %85 = vector.extract_strided_slice %28 {offsets = [9, 0], sizes = [1, 256], strides = [1, 1]} : vector<32x256xf32> to vector<1x256xf32>
    %86 = vector.broadcast %84 : vector<8x1xf32> to vector<8x256xf32>
    %87 = vector.broadcast %85 : vector<1x256xf32> to vector<8x256xf32>
    %88 = arith.mulf %86, %87 : vector<8x256xf32>
    %89 = arith.addf %83, %88 : vector<8x256xf32>
    %90 = vector.extract_strided_slice %5 {offsets = [0, 10], sizes = [8, 1], strides = [1, 1]} : vector<8x32xf32> to vector<8x1xf32>
    %91 = vector.extract_strided_slice %28 {offsets = [10, 0], sizes = [1, 256], strides = [1, 1]} : vector<32x256xf32> to vector<1x256xf32>
    %92 = vector.broadcast %90 : vector<8x1xf32> to vector<8x256xf32>
    %93 = vector.broadcast %91 : vector<1x256xf32> to vector<8x256xf32>
    %94 = arith.mulf %92, %93 : vector<8x256xf32>
    %95 = arith.addf %89, %94 : vector<8x256xf32>
    %96 = vector.extract_strided_slice %5 {offsets = [0, 11], sizes = [8, 1], strides = [1, 1]} : vector<8x32xf32> to vector<8x1xf32>
    %97 = vector.extract_strided_slice %28 {offsets = [11, 0], sizes = [1, 256], strides = [1, 1]} : vector<32x256xf32> to vector<1x256xf32>
    %98 = vector.broadcast %96 : vector<8x1xf32> to vector<8x256xf32>
    %99 = vector.broadcast %97 : vector<1x256xf32> to vector<8x256xf32>
    %100 = arith.mulf %98, %99 : vector<8x256xf32>
    %101 = arith.addf %95, %100 : vector<8x256xf32>
    %102 = vector.extract_strided_slice %5 {offsets = [0, 12], sizes = [8, 1], strides = [1, 1]} : vector<8x32xf32> to vector<8x1xf32>
    %103 = vector.extract_strided_slice %28 {offsets = [12, 0], sizes = [1, 256], strides = [1, 1]} : vector<32x256xf32> to vector<1x256xf32>
    %104 = vector.broadcast %102 : vector<8x1xf32> to vector<8x256xf32>
    %105 = vector.broadcast %103 : vector<1x256xf32> to vector<8x256xf32>
    %106 = arith.mulf %104, %105 : vector<8x256xf32>
    %107 = arith.addf %101, %106 : vector<8x256xf32>
    %108 = vector.extract_strided_slice %5 {offsets = [0, 13], sizes = [8, 1], strides = [1, 1]} : vector<8x32xf32> to vector<8x1xf32>
    %109 = vector.extract_strided_slice %28 {offsets = [13, 0], sizes = [1, 256], strides = [1, 1]} : vector<32x256xf32> to vector<1x256xf32>
    %110 = vector.broadcast %108 : vector<8x1xf32> to vector<8x256xf32>
    %111 = vector.broadcast %109 : vector<1x256xf32> to vector<8x256xf32>
    %112 = arith.mulf %110, %111 : vector<8x256xf32>
    %113 = arith.addf %107, %112 : vector<8x256xf32>
    %114 = vector.extract_strided_slice %5 {offsets = [0, 14], sizes = [8, 1], strides = [1, 1]} : vector<8x32xf32> to vector<8x1xf32>
    %115 = vector.extract_strided_slice %28 {offsets = [14, 0], sizes = [1, 256], strides = [1, 1]} : vector<32x256xf32> to vector<1x256xf32>
    %116 = vector.broadcast %114 : vector<8x1xf32> to vector<8x256xf32>
    %117 = vector.broadcast %115 : vector<1x256xf32> to vector<8x256xf32>
    %118 = arith.mulf %116, %117 : vector<8x256xf32>
    %119 = arith.addf %113, %118 : vector<8x256xf32>
    %120 = vector.extract_strided_slice %5 {offsets = [0, 15], sizes = [8, 1], strides = [1, 1]} : vector<8x32xf32> to vector<8x1xf32>
    %121 = vector.extract_strided_slice %28 {offsets = [15, 0], sizes = [1, 256], strides = [1, 1]} : vector<32x256xf32> to vector<1x256xf32>
    %122 = vector.broadcast %120 : vector<8x1xf32> to vector<8x256xf32>
    %123 = vector.broadcast %121 : vector<1x256xf32> to vector<8x256xf32>
    %124 = arith.mulf %122, %123 : vector<8x256xf32>
    %125 = arith.addf %119, %124 : vector<8x256xf32>
    %126 = vector.extract_strided_slice %5 {offsets = [0, 16], sizes = [8, 1], strides = [1, 1]} : vector<8x32xf32> to vector<8x1xf32>
    %127 = vector.extract_strided_slice %28 {offsets = [16, 0], sizes = [1, 256], strides = [1, 1]} : vector<32x256xf32> to vector<1x256xf32>
    %128 = vector.broadcast %126 : vector<8x1xf32> to vector<8x256xf32>
    %129 = vector.broadcast %127 : vector<1x256xf32> to vector<8x256xf32>
    %130 = arith.mulf %128, %129 : vector<8x256xf32>
    %131 = arith.addf %125, %130 : vector<8x256xf32>
    %132 = vector.extract_strided_slice %5 {offsets = [0, 17], sizes = [8, 1], strides = [1, 1]} : vector<8x32xf32> to vector<8x1xf32>
    %133 = vector.extract_strided_slice %28 {offsets = [17, 0], sizes = [1, 256], strides = [1, 1]} : vector<32x256xf32> to vector<1x256xf32>
    %134 = vector.broadcast %132 : vector<8x1xf32> to vector<8x256xf32>
    %135 = vector.broadcast %133 : vector<1x256xf32> to vector<8x256xf32>
    %136 = arith.mulf %134, %135 : vector<8x256xf32>
    %137 = arith.addf %131, %136 : vector<8x256xf32>
    %138 = vector.extract_strided_slice %5 {offsets = [0, 18], sizes = [8, 1], strides = [1, 1]} : vector<8x32xf32> to vector<8x1xf32>
    %139 = vector.extract_strided_slice %28 {offsets = [18, 0], sizes = [1, 256], strides = [1, 1]} : vector<32x256xf32> to vector<1x256xf32>
    %140 = vector.broadcast %138 : vector<8x1xf32> to vector<8x256xf32>
    %141 = vector.broadcast %139 : vector<1x256xf32> to vector<8x256xf32>
    %142 = arith.mulf %140, %141 : vector<8x256xf32>
    %143 = arith.addf %137, %142 : vector<8x256xf32>
    %144 = vector.extract_strided_slice %5 {offsets = [0, 19], sizes = [8, 1], strides = [1, 1]} : vector<8x32xf32> to vector<8x1xf32>
    %145 = vector.extract_strided_slice %28 {offsets = [19, 0], sizes = [1, 256], strides = [1, 1]} : vector<32x256xf32> to vector<1x256xf32>
    %146 = vector.broadcast %144 : vector<8x1xf32> to vector<8x256xf32>
    %147 = vector.broadcast %145 : vector<1x256xf32> to vector<8x256xf32>
    %148 = arith.mulf %146, %147 : vector<8x256xf32>
    %149 = arith.addf %143, %148 : vector<8x256xf32>
    %150 = vector.extract_strided_slice %5 {offsets = [0, 20], sizes = [8, 1], strides = [1, 1]} : vector<8x32xf32> to vector<8x1xf32>
    %151 = vector.extract_strided_slice %28 {offsets = [20, 0], sizes = [1, 256], strides = [1, 1]} : vector<32x256xf32> to vector<1x256xf32>
    %152 = vector.broadcast %150 : vector<8x1xf32> to vector<8x256xf32>
    %153 = vector.broadcast %151 : vector<1x256xf32> to vector<8x256xf32>
    %154 = arith.mulf %152, %153 : vector<8x256xf32>
    %155 = arith.addf %149, %154 : vector<8x256xf32>
    %156 = vector.extract_strided_slice %5 {offsets = [0, 21], sizes = [8, 1], strides = [1, 1]} : vector<8x32xf32> to vector<8x1xf32>
    %157 = vector.extract_strided_slice %28 {offsets = [21, 0], sizes = [1, 256], strides = [1, 1]} : vector<32x256xf32> to vector<1x256xf32>
    %158 = vector.broadcast %156 : vector<8x1xf32> to vector<8x256xf32>
    %159 = vector.broadcast %157 : vector<1x256xf32> to vector<8x256xf32>
    %160 = arith.mulf %158, %159 : vector<8x256xf32>
    %161 = arith.addf %155, %160 : vector<8x256xf32>
    %162 = vector.extract_strided_slice %5 {offsets = [0, 22], sizes = [8, 1], strides = [1, 1]} : vector<8x32xf32> to vector<8x1xf32>
    %163 = vector.extract_strided_slice %28 {offsets = [22, 0], sizes = [1, 256], strides = [1, 1]} : vector<32x256xf32> to vector<1x256xf32>
    %164 = vector.broadcast %162 : vector<8x1xf32> to vector<8x256xf32>
    %165 = vector.broadcast %163 : vector<1x256xf32> to vector<8x256xf32>
    %166 = arith.mulf %164, %165 : vector<8x256xf32>
    %167 = arith.addf %161, %166 : vector<8x256xf32>
    %168 = vector.extract_strided_slice %5 {offsets = [0, 23], sizes = [8, 1], strides = [1, 1]} : vector<8x32xf32> to vector<8x1xf32>
    %169 = vector.extract_strided_slice %28 {offsets = [23, 0], sizes = [1, 256], strides = [1, 1]} : vector<32x256xf32> to vector<1x256xf32>
    %170 = vector.broadcast %168 : vector<8x1xf32> to vector<8x256xf32>
    %171 = vector.broadcast %169 : vector<1x256xf32> to vector<8x256xf32>
    %172 = arith.mulf %170, %171 : vector<8x256xf32>
    %173 = arith.addf %167, %172 : vector<8x256xf32>
    %174 = vector.extract_strided_slice %5 {offsets = [0, 24], sizes = [8, 1], strides = [1, 1]} : vector<8x32xf32> to vector<8x1xf32>
    %175 = vector.extract_strided_slice %28 {offsets = [24, 0], sizes = [1, 256], strides = [1, 1]} : vector<32x256xf32> to vector<1x256xf32>
    %176 = vector.broadcast %174 : vector<8x1xf32> to vector<8x256xf32>
    %177 = vector.broadcast %175 : vector<1x256xf32> to vector<8x256xf32>
    %178 = arith.mulf %176, %177 : vector<8x256xf32>
    %179 = arith.addf %173, %178 : vector<8x256xf32>
    %180 = vector.extract_strided_slice %5 {offsets = [0, 25], sizes = [8, 1], strides = [1, 1]} : vector<8x32xf32> to vector<8x1xf32>
    %181 = vector.extract_strided_slice %28 {offsets = [25, 0], sizes = [1, 256], strides = [1, 1]} : vector<32x256xf32> to vector<1x256xf32>
    %182 = vector.broadcast %180 : vector<8x1xf32> to vector<8x256xf32>
    %183 = vector.broadcast %181 : vector<1x256xf32> to vector<8x256xf32>
    %184 = arith.mulf %182, %183 : vector<8x256xf32>
    %185 = arith.addf %179, %184 : vector<8x256xf32>
    %186 = vector.extract_strided_slice %5 {offsets = [0, 26], sizes = [8, 1], strides = [1, 1]} : vector<8x32xf32> to vector<8x1xf32>
    %187 = vector.extract_strided_slice %28 {offsets = [26, 0], sizes = [1, 256], strides = [1, 1]} : vector<32x256xf32> to vector<1x256xf32>
    %188 = vector.broadcast %186 : vector<8x1xf32> to vector<8x256xf32>
    %189 = vector.broadcast %187 : vector<1x256xf32> to vector<8x256xf32>
    %190 = arith.mulf %188, %189 : vector<8x256xf32>
    %191 = arith.addf %185, %190 : vector<8x256xf32>
    %192 = vector.extract_strided_slice %5 {offsets = [0, 27], sizes = [8, 1], strides = [1, 1]} : vector<8x32xf32> to vector<8x1xf32>
    %193 = vector.extract_strided_slice %28 {offsets = [27, 0], sizes = [1, 256], strides = [1, 1]} : vector<32x256xf32> to vector<1x256xf32>
    %194 = vector.broadcast %192 : vector<8x1xf32> to vector<8x256xf32>
    %195 = vector.broadcast %193 : vector<1x256xf32> to vector<8x256xf32>
    %196 = arith.mulf %194, %195 : vector<8x256xf32>
    %197 = arith.addf %191, %196 : vector<8x256xf32>
    %198 = vector.extract_strided_slice %5 {offsets = [0, 28], sizes = [8, 1], strides = [1, 1]} : vector<8x32xf32> to vector<8x1xf32>
    %199 = vector.extract_strided_slice %28 {offsets = [28, 0], sizes = [1, 256], strides = [1, 1]} : vector<32x256xf32> to vector<1x256xf32>
    %200 = vector.broadcast %198 : vector<8x1xf32> to vector<8x256xf32>
    %201 = vector.broadcast %199 : vector<1x256xf32> to vector<8x256xf32>
    %202 = arith.mulf %200, %201 : vector<8x256xf32>
    %203 = arith.addf %197, %202 : vector<8x256xf32>
    %204 = vector.extract_strided_slice %5 {offsets = [0, 29], sizes = [8, 1], strides = [1, 1]} : vector<8x32xf32> to vector<8x1xf32>
    %205 = vector.extract_strided_slice %28 {offsets = [29, 0], sizes = [1, 256], strides = [1, 1]} : vector<32x256xf32> to vector<1x256xf32>
    %206 = vector.broadcast %204 : vector<8x1xf32> to vector<8x256xf32>
    %207 = vector.broadcast %205 : vector<1x256xf32> to vector<8x256xf32>
    %208 = arith.mulf %206, %207 : vector<8x256xf32>
    %209 = arith.addf %203, %208 : vector<8x256xf32>
    %210 = vector.extract_strided_slice %5 {offsets = [0, 30], sizes = [8, 1], strides = [1, 1]} : vector<8x32xf32> to vector<8x1xf32>
    %211 = vector.extract_strided_slice %28 {offsets = [30, 0], sizes = [1, 256], strides = [1, 1]} : vector<32x256xf32> to vector<1x256xf32>
    %212 = vector.broadcast %210 : vector<8x1xf32> to vector<8x256xf32>
    %213 = vector.broadcast %211 : vector<1x256xf32> to vector<8x256xf32>
    %214 = arith.mulf %212, %213 : vector<8x256xf32>
    %215 = arith.addf %209, %214 : vector<8x256xf32>
    %216 = vector.extract_strided_slice %5 {offsets = [0, 31], sizes = [8, 1], strides = [1, 1]} : vector<8x32xf32> to vector<8x1xf32>
    %217 = vector.extract_strided_slice %28 {offsets = [31, 0], sizes = [1, 256], strides = [1, 1]} : vector<32x256xf32> to vector<1x256xf32>
    %218 = vector.broadcast %216 : vector<8x1xf32> to vector<8x256xf32>
    %219 = vector.broadcast %217 : vector<1x256xf32> to vector<8x256xf32>
    %220 = arith.mulf %218, %219 : vector<8x256xf32>
    %221 = arith.addf %215, %220 : vector<8x256xf32>
    %cst_14 = arith.constant 0.000000e+00 : f32
    %222 = vector.broadcast %cst_14 : f32 to vector<8x256xf32>
    %223 = arith.maximumf %221, %222 : vector<8x256xf32>
    %224 = vector.broadcast %7 : vector<8x1xf32> to vector<8x256xf32>
    %225 = arith.mulf %224, %223 : vector<8x256xf32>
    %cst_15 = arith.constant dense<0.000000e+00> : vector<256xf32>
    %226 = vector.multi_reduction <add>, %225, %cst_15 [0] : vector<8x256xf32> to vector<256xf32>
    %227 = vector.shape_cast %226 : vector<256xf32> to vector<1x256xf32>
    %228 = vector.broadcast %8 : vector<1x1xf32> to vector<1x256xf32>
    %229 = arith.addf %227, %228 : vector<1x256xf32>
    %c0_16 = arith.constant 0 : index
    %c0_17 = arith.constant 0 : index
    %230 = vector.load %arg3[%c0_16, %c0_17] : memref<1x256xf32, #tpu.memory_space<vmem>>, vector<1x256xf32>
    tpu.vector_store %arg3[%c0_16, %c0_17], %229 {strides = array<i32>} : memref<1x256xf32, #tpu.memory_space<vmem>>, vector<1x256xf32>,
    return
  }
  func.func @transform_0(%arg0: i32) -> (i32, i32) {
    %c0_i32 = arith.constant 0 : i32
    %c0_i32_0 = arith.constant 0 : i32
    return %c0_i32, %arg0 : i32, i32
  }
  func.func @transform_1(%arg0: i32) -> (i32, i32) {
    %c0_i32 = arith.constant 0 : i32
    %c0_i32_0 = arith.constant 0 : i32
    %c0_i32_1 = arith.constant 0 : i32
    return %c0_i32, %c0_i32_0 : i32, i32
  }
  func.func @transform_2(%arg0: i32) -> (i32, i32) {
    %c0_i32 = arith.constant 0 : i32
    %c0_i32_0 = arith.constant 0 : i32
    return %c0_i32, %arg0 : i32, i32
  }
}

</mosaic_0001>

<bundles_post_ra>
// kernel: brain_forward.1
= control target key start
LH: loop header
LB: loop body
LE: loop exit
PB: predicated region body
PF: predicated region fallthrough
CT: control target
= control target key end

     0   :  { %7 = vsyncpa [#allocation3], 0  ;;  %s1390_s0 = inlined_call_operand.vmem [shape: f32[2,300], index: 0, kind: input, shape index: {}]   ;;  %s1391_s1 = inlined_call_operand.vmem [shape: f32[64,34], index: 1, kind: input, shape index: {}]   ;;  %s1392_s2 = inlined_call_operand.hbm [shape: f32[1,300], index: 2, kind: output, shape index: {}]  }
   0x1   :  { %9 = vsyncpa [#allocation3 + $0x1], 0  ;;  %s1036_s9 = smov 0   ;;  %s1038_s10 = smov 0  }
   0x2   :  { %s1040_s11 = smov 0   ;;  %s1042_s12 = smov 0  }
   0x3 LB: > { %s773_s13 = sadd.s32 4294967295, %s984_s12   ;;  %s774_s14 = sadd.s32 4294967294, %s984_s12   ;;  %s984_s12 = sphi %s1042_s12, %s1398_s12   ;;  %s980_s11 = sphi %s1040_s11, %s1397_s11   ;;  %s976_s10 = sphi %s1038_s10, %s1396_s10   ;;  %s972_s9 = sphi %s1036_s9, %s1395_s9  }
   0x4   : > { %s1059_s15 = sadd.s32 1, %s984_s12   ;;  %s69_s16 = sadd.s32 1, %s980_s11 }
   0x5   : > { %s66_s17 = ssub.s32 %s984_s12, %s1059_s15  ;;  %p79_p0 = scmp.ne.s32.totalorder %s980_s11, %s976_s10 }
   0x6   : > { %p67_p1 = scmp.eq.s32.totalorder %s66_s17, 0  ;;  %p80_p2 = scmp.eq.s32.totalorder %s773_s13, 1 }
   0x7   : > { %p85_p3 = scmp.ne.s32.totalorder %s976_s10, %s972_s9  ;;  %p86_p4 = scmp.eq.s32.totalorder %s774_s14, 1 }
   0x8   : > { %s1071_s18 = scalar_select %p67_p1, %s980_s11, %s69_s16  }
   0x9   : > { %p1073_p5 = por %p80_p2, %p79_p0  ;;  %p1077_p6 = por %p86_p4, %p85_p3 }
   0xa   : > { %p777_p7 = scmp.ge.s32.totalorder %s984_s12, 1  ;;  %p124_p8 = scmp.lt.s32.totalorder %s984_s12, 3 }
   0xc   : > { %p125_p9 = pnand %p777_p7, %p124_p8 }
   0xd   : > { %s1134_s7 = sshll.u32 (!%p125_p9), %s773_s13, 1  ;;  %s147_s23 = sand.u32 (!%p125_p9), 1, %s976_s10  }
   0xe   : > { %128 = sbr.rel (%p125_p9) target bundleno = 407 (0x197), region = 28  ;;  %p155_p10 = scmp.lt.s32.totalorder (!%p125_p9), %s1134_s7, 2 }
   0xf   : > { %s778_s24 = sshll.u32 (!%p125_p9), %s147_s23, 1  ;;  %s1331_s26 = scalar_lea.sflag (!%p125_p9), [#allocation3], %s147_s23 }
  0x10   : > { %s149_s25 = scalar_lea.vmem (!%p125_p9), [#allocation2], %s778_s24 }
  0x13   : > { %v170_v0 = vld [vmem:[%s1391_s1 + $0x8] sm:$0xff]  ;;  %v169_v1 = vld [vmem:[%s1391_s1] sm:$0xff]  ;;  %v986_v2 = vmov 0   ;;  %v987_v3 = vmov 32   ;;  %v988_v4 = vmov 1   ;;  %v1092_v5 = vld [vmem:[%s1391_s1 + $0x18] sm:$0xff] }
  0x14   : > { %872 = vset.pattern.permute.xlu1 %v986_v2  ;;  %870 = vset.pattern.permute.xlu0 %v986_v2  ;;  %v1097_v6 = vld [vmem:[%s1391_s1 + $0x10] sm:$0xff]  ;;  %v1104_v7 = vld [vmem:[%s1391_s1 + $0x28] sm:$0xff]  ;;  %v989_v9 = vmov 3   ;;  %v990_v10 = vmov 4   ;;  %v991_v11 = vmov 5   ;;  %v992_v12 = vmov 6  }
  0x15   : > { %184 = vperm.xlu0 %870, %v170_v0   ;;  %179 = vperm.xlu1 %872, %v169_v1   ;;  %v1110_v8 = vld [vmem:[%s1391_s1 + $0x30] sm:$0xff]  ;;  %v993_v13 = vmov 8   ;;  %v1122_v14 = vld [vmem:[%s1391_s1 + $0x20] sm:$0xff]  ;;  %v994_v15 = vmov 9   ;;  %v995_v16 = vmov 10   ;;  %v996_v17 = vmov 13  }
  0x16   : > { %874 = vset.pattern.permute.xlu2 %v987_v3  ;;  %v997_v18 = vmov 11   ;;  %v998_v19 = vmov 2   ;;  %v999_v20 = vmov 15   ;;  %v1000_v21 = vmov 14   ;;  %s156_s8 = scalar_select %p155_p10, %s1134_s7, 2 }
  0x17   : > { %225 = vperm.xlu2 %874, %v170_v0   ;;  %v1001_v22 = vmov 7   ;;  %v1002_v23 = vmov 18   ;;  %v1003_v24 = vmov 16   ;;  %v1004_v25 = vmov 20   ;;  %s703_s27 = ssub.s32 (%p1073_p5), 3, %s1134_s7 }
  0x18   : > { %s780_s13 = sshll.u32 %s156_s8, 1  ;;  %v1005_v26 = vmov 12   ;;  %v1006_v30 = vmov 23   ;;  %v1007_v31 = vmov 19   ;;  %v1008_v36 = vmov 17   ;;  %p704_p11 = scmp.lt.s32.totalorder (%p1073_p5), %s703_s27, 2 }
  0x19   : > { %s158_s17 = scalar_lea.vmem %s1390_s0, %s780_s13  ;;  %v1009_v48 = vmov 25   ;;  %v1010_v53 = vmov 21   ;;  %v1011_v54 = vmov 22   ;;  %vm256_vm0 = vcmask 130048  }
  0x1a   : > { %v168_v27 = vld [vmem:[%s158_s17] sm:$0xf]  ;;  %vm686_vm1 = vcmask 1040384  }
  0x1b   : > { %v188_v32 = vperm.slane %v168_v27, 0  ;;  %v189_v33 = vperm.slane %v168_v27, 2  ;;  %v206_v34 = vperm.slane %v168_v27, 1  ;;  %v207_v35 = vperm.slane %v168_v27, 3 }
  0x1d   : > { %871 = vset.pattern.permute.xlu0 %v988_v4  ;;  %873 = vset.pattern.permute.xlu1 %v988_v4  ;;  %v192_v38 = vperm.slane %v188_v32, 0  ;;  %v193_v39 = vperm.slane %v189_v33, 0  ;;  %v210_v40 = vperm.slane %v206_v34, 1  ;;  %v211_v41 = vperm.slane %v207_v35, 1 }
  0x1e   : > { %203 = vperm.xlu0 %871, %v170_v0   ;;  %199 = vperm.xlu1 %873, %v169_v1  }
  0x1f   : > { %221 = vperm.xlu2 %874, %v169_v1  }
  0x26   : > { %875 = vset.pattern.permute.xlu1 %v987_v3  ;;  %876 = vset.pattern.permute.xlu0 %v987_v3 }
  0x27   : > { %243 = vperm.xlu2 %874, %v1092_v5   ;;  %238 = vperm.xlu1 %875, %v1097_v6  }
  0x28   : > { %248 = vperm.xlu0 %876, %v1122_v14  }
  0x2f   : > { %253 = vperm.xlu1 %875, %v1104_v7   ;;  %877 = vset.pattern.permute.xlu2 %v986_v2 }
  0x30   : > { %333 = vperm.xlu2 %877, %v1110_v8   ;;  %879 = vset.pattern.permute.xlu0 %v998_v19 }
  0x31   : > { %357 = vperm.xlu0 %879, %v1110_v8  }
  0x37   : > { %341 = vperm.xlu1 %875, %v1110_v8  }
  0x38   : > { %878 = vset.pattern.permute.xlu2 %v988_v4  ;;  %v1012_v4 = vmov 28  }
  0x39   : > { %347 = vperm.xlu2 %878, %v1110_v8   ;;  %884 = vset.pattern.permute.xlu0 %v1001_v22 }
  0x3a   : > { %407 = vperm.xlu0 %884, %v1110_v8  }
  0x3f   : > { %880 = vset.pattern.permute.xlu1 %v989_v9  ;;  %v1013_v9 = vmov 24  }
  0x40   : > { %367 = vperm.xlu1 %880, %v1110_v8  }
  0x41   : > { %881 = vset.pattern.permute.xlu2 %v990_v10  ;;  %v1014_v10 = vmov 27  }
  0x42   : > { %377 = vperm.xlu2 %881, %v1110_v8   ;;  %889 = vset.pattern.permute.xlu0 %v1005_v26 }
  0x43   : > { %457 = vperm.xlu0 %889, %v1110_v8  }
  0x48   : > { %882 = vset.pattern.permute.xlu1 %v991_v11  ;;  %v1016_v11 = vmov 26  }
  0x49   : > { %387 = vperm.xlu1 %882, %v1110_v8  }
  0x4a   : > { %883 = vset.pattern.permute.xlu2 %v992_v12  ;;  %v1017_v12 = vmov 33  }
  0x4b   : > { %397 = vperm.xlu2 %883, %v1110_v8   ;;  %894 = vset.pattern.permute.xlu0 %v1008_v36 }
  0x4c   : > { %507 = vperm.xlu0 %894, %v1110_v8  }
  0x51   : > { %885 = vset.pattern.permute.xlu1 %v993_v13  ;;  %v1018_v13 = vmov 29  }
  0x52   : > { %417 = vperm.xlu1 %885, %v1110_v8  }
  0x53   : > { %886 = vset.pattern.permute.xlu2 %v994_v15 }
  0x54   : > { %427 = vperm.xlu2 %886, %v1110_v8   ;;  %899 = vset.pattern.permute.xlu0 %v1011_v54 }
  0x55   : > { %557 = vperm.xlu0 %899, %v1110_v8  }
  0x5a   : > { %887 = vset.pattern.permute.xlu1 %v995_v16 }
  0x5b   : > { %437 = vperm.xlu1 %887, %v1110_v8  }
  0x5c   : > { %888 = vset.pattern.permute.xlu2 %v997_v18 }
  0x5d   : > { %447 = vperm.xlu2 %888, %v1110_v8   ;;  %904 = vset.pattern.permute.xlu0 %v1014_v10 }
  0x5e   : > { %607 = vperm.xlu0 %904, %v1110_v8  }
  0x63   : > { %890 = vset.pattern.permute.xlu1 %v996_v17 }
  0x64   : > { %467 = vperm.xlu1 %890, %v1110_v8  }
  0x65   : > { %891 = vset.pattern.permute.xlu2 %v1000_v21 }
  0x66   : > { %477 = vperm.xlu2 %891, %v1110_v8   ;;  %909 = vset.pattern.permute.xlu0 %v1017_v12 }
  0x67   : > { %659 = vperm.xlu0 %909, %v1110_v8  }
  0x6c   : > { %892 = vset.pattern.permute.xlu1 %v999_v20 }
  0x6d   : > { %487 = vperm.xlu1 %892, %v1110_v8  }
  0x6e   : > { %893 = vset.pattern.permute.xlu2 %v1003_v24 }
  0x6f   : > { %497 = vperm.xlu2 %893, %v1110_v8  }
  0x71   : > { %v226_v37 = vpop.permute.xlu2 %225 }
  0x75   : > { %895 = vset.pattern.permute.xlu1 %v1002_v23 }
  0x76   : > { %517 = vperm.xlu1 %895, %v1110_v8  }
  0x77   : > { %896 = vset.pattern.permute.xlu2 %v1007_v31 }
  0x78   : > { %527 = vperm.xlu2 %896, %v1110_v8  }
  0x79   : > { %v222_v59 = vpop.permute.xlu2 %221 }
  0x7e   : > { %897 = vset.pattern.permute.xlu1 %v1004_v25 }
  0x7f   : > { %537 = vperm.xlu1 %897, %v1110_v8  }
  0x80   : > { %898 = vset.pattern.permute.xlu2 %v1010_v53 }
  0x81   : > { %547 = vperm.xlu2 %898, %v1110_v8   ;;  %v244_v15 = vpop.permute.xlu2 %243 }
  0x87   : > { %v185_v28 = vpop.permute.xlu0 %184  ;;  %v180_v29 = vpop.permute.xlu1 %179  ;;  %900 = vset.pattern.permute.xlu1 %v1006_v30 }
  0x88   : > { %567 = vperm.xlu1 %900, %v1110_v8   ;;  %v196_v42 = vmul.f32 %v192_v38, %v185_v28  ;;  %v197_v43 = vmul.f32 %v193_v39, %v185_v28  ;;  %v194_v44 = vmul.f32 %v192_v38, %v180_v29  ;;  %v195_v45 = vmul.f32 %v193_v39, %v180_v29 }
  0x89   : > { %901 = vset.pattern.permute.xlu2 %v1013_v9 }
  0x8a   : > { %577 = vperm.xlu2 %901, %v1110_v8   ;;  %v334_v17 = vpop.permute.xlu2 %333 }
  0x90   : > { %v204_v46 = vpop.permute.xlu0 %203  ;;  %v200_v47 = vpop.permute.xlu1 %199  ;;  %902 = vset.pattern.permute.xlu1 %v1009_v48 }
  0x91   : > { %v214_v49 = vmul.f32 %v210_v40, %v204_v46  ;;  %v215_v50 = vmul.f32 %v211_v41, %v204_v46  ;;  %v212_v51 = vmul.f32 %v210_v40, %v200_v47  ;;  %v213_v52 = vmul.f32 %v211_v41, %v200_v47  ;;  %587 = vperm.xlu1 %902, %v1110_v8  }
  0x92   : > { %903 = vset.pattern.permute.xlu2 %v1016_v11 }
  0x93   : > { %v218_v55 = vadd.f32 %v214_v49, %v196_v42  ;;  %v219_v56 = vadd.f32 %v215_v50, %v197_v43  ;;  %v216_v57 = vadd.f32 %v212_v51, %v194_v44  ;;  %v217_v58 = vadd.f32 %v213_v52, %v195_v45  ;;  %597 = vperm.xlu2 %903, %v1110_v8   ;;  %v348_v19 = vpop.permute.xlu2 %347 }
  0x95   : > { %v230_v60 = vadd.f32 %v226_v37, %v218_v55  ;;  %v231_v61 = vadd.f32 %v226_v37, %v219_v56  ;;  %v228_v62 = vadd.f32 %v222_v59, %v216_v57  ;;  %v229_v63 = vadd.f32 %v222_v59, %v217_v58 }
  0x97   : > { %v234_v0 = vmax.f32 %v230_v60, 0.0  ;;  %v235_v1 = vmax.f32 %v231_v61, 0.0  ;;  %v232_v2 = vmax.f32 %v228_v62, 0.0  ;;  %v233_v3 = vmax.f32 %v229_v63, 0.0 }
  0x99   : > { %279 = vmatpush.msra.mxu0 %v234_v0  ;;  %794 = vmatpush.msra.mxu2 %v234_v0 }
  0x9a   : > { %308 = vmatpush.msra.mxu1 %v235_v1  ;;  %796 = vmatpush.msra.mxu3 %v235_v1  ;;  %v1201_v29 = vpop.permute.xlu0 %248 }
  0x9b   : > { %280 = vmatpush.msra.mxu0 %v232_v2  ;;  %795 = vmatpush.msra.mxu2 %v232_v2 }
  0x9c   : > { %309 = vmatpush.msra.mxu1 %v233_v3  ;;  %797 = vmatpush.msra.mxu3 %v233_v3  ;;  %v1182_v21 = vpop.permute.xlu2 %377 }
  0x9d   : > { %781 = vmatmul.msk.f32.vlgmr.msra.gmra.mxu0 %vm256_vm0, %v1097_v6  ;;  %783 = vmatmul.msk.f32.vlgmr.msra.gmra.mxu2 %vm256_vm0, %v1122_v14 }
  0x9e   : > { %785 = vmatmul.msk.f32.vlgmr.msra.gmra.mxu1 %vm256_vm0, %v1097_v6  ;;  %787 = vmatmul.msk.f32.vlgmr.msra.gmra.mxu3 %vm256_vm0, %v1122_v14  ;;  %v1015_v6 = vmov 30   ;;  %v239_v14 = vpop.permute.xlu1 %238 }
  0x9f   : > { %905 = vset.pattern.permute.xlu1 %v1012_v4  ;;  %906 = vset.pattern.permute.xlu2 %v1018_v13 }
  0xa0   : > { %617 = vperm.xlu1 %905, %v1110_v8   ;;  %627 = vperm.xlu2 %906, %v1110_v8  }
  0xa3   : > { %v358_v40 = vpop.permute.xlu0 %357 }
  0xa5   : > { %782 = vmatmul.msk.f32.gmra.mxu0 %vm256_vm0, %v1092_v5  ;;  %784 = vmatmul.msk.f32.gmra.mxu2 %vm256_vm0, %v1104_v7  ;;  %v1186_v23 = vpop.permute.xlu2 %397 }
  0xa6   : > { %786 = vmatmul.msk.f32.gmra.mxu1 %vm256_vm0, %v1092_v5  ;;  %788 = vmatmul.msk.f32.gmra.mxu3 %vm256_vm0, %v1104_v7  ;;  %v1019_v5 = vmov 31   ;;  %v176_v7 = vld [vmem:[%s1391_s1 + $0x38] sm:$0x1]  ;;  %v1180_v16 = vpop.permute.xlu1 %253 }
  0xa8   : > { %907 = vset.pattern.permute.xlu1 %v1015_v6  ;;  %908 = vset.pattern.permute.xlu2 %v1019_v5 }
  0xa9   : > { %637 = vperm.xlu1 %907, %v1110_v8   ;;  %647 = vperm.xlu2 %908, %v1110_v8  }
  0xac   : > { %v408_v13 = vpop.permute.xlu0 %407 }
  0xae   : > { %v342_v18 = vpop.permute.xlu1 %341  ;;  %v1191_v24 = vpop.permute.xlu2 %427 }
  0xb1   : > { %910 = vset.pattern.permute.xlu1 %v1017_v12 }
  0xb2   : > { %678 = vperm.xlu1 %910, %v176_v7  }
  0xb6   : > { %v368_v20 = vpop.permute.xlu1 %367 }
  0xb7   : > { %v1195_v26 = vpop.permute.xlu2 %447 }
  0xbe   : > { %v1184_v22 = vpop.permute.xlu1 %387 }
  0xc0   : > { %v1199_v28 = vpop.permute.xlu2 %477 }
  0xc6   : > { %v1189_v8 = vpop.permute.xlu1 %417 }
  0xc9   : > { %v1207_v39 = vpop.permute.xlu2 %497 }
  0xce   : > { %v1193_v25 = vpop.permute.xlu1 %437 }
  0xd2   : > { %v1217_v10 = vpop.permute.xlu2 %527 }
  0xd6   : > { %v1197_v27 = vpop.permute.xlu1 %467 }
  0xdf   : > { %v1203_v35 = vpop.permute.xlu1 %487 }
  0xe8   : > { %v1213_v61 = vpop.permute.xlu1 %517 }
 0x11a   : > { %v282_v30 = vpop.f32.mrf.mxu0 }
 0x11b   : > { %v283_v31 = vadd.f32 %v282_v30, %v239_v14  ;;  %v311_v32 = vpop.f32.mrf.mxu1 }
 0x11c   : > { %v312_v33 = vadd.f32 %v311_v32, %v239_v14 }
 0x11d   : > { %v323_v34 = vmax.f32 %v283_v31, 0.0 }
 0x11e   : > { %v1205_v38 = vmax.f32 %v312_v33, 0.0 }
 0x11f   : > { %v336_v36 = vperm.slane %v323_v34, 0  ;;  %v350_v37 = vperm.slane %v323_v34, 1  ;;  %v360_v42 = vperm.slane %v323_v34, 2  ;;  %v370_v43 = vperm.slane %v323_v34, 3 }
 0x120   : > { %v337_v46 = vperm.slane %v1205_v38, 0  ;;  %v351_v47 = vperm.slane %v1205_v38, 1  ;;  %v380_v48 = vperm.slane %v323_v34, 4  ;;  %v361_v52 = vperm.slane %v1205_v38, 2 }
 0x121   : > { %v338_v41 = vmul.f32 %v336_v36, %v334_v17  ;;  %v352_v45 = vmul.f32 %v350_v37, %v348_v19  ;;  %v362_v50 = vmul.f32 %v360_v42, %v358_v40  ;;  %v372_v55 = vmul.f32 %v370_v43, %v368_v20 }
 0x122   : > { %v339_v51 = vmul.f32 %v337_v46, %v334_v17  ;;  %v285_v53 = vpop.f32.mrf.mxu0  ;;  %v390_v56 = vperm.slane %v323_v34, 5  ;;  %v353_v59 = vmul.f32 %v351_v47, %v348_v19  ;;  %v371_v60 = vperm.slane %v1205_v38, 3 }
 0x123   : > { %v344_v44 = vadd.f32 %v342_v18, %v338_v41  ;;  %v314_v54 = vpop.f32.mrf.mxu1  ;;  %v382_v62 = vmul.f32 %v380_v48, %v1182_v21  ;;  %v400_v63 = vperm.slane %v323_v34, 6  ;;  %v286_v0 = vadd.f32 %v285_v53, %v244_v15  ;;  %v1236_v48 = vpop.permute.xlu1 %537 }
 0x124   : > { %v345_v58 = vadd.f32 %v342_v18, %v339_v51  ;;  %v315_v1 = vadd.f32 %v314_v54, %v244_v15  ;;  %v363_v4 = vmul.f32 %v361_v52, %v358_v40  ;;  %v381_v9 = vperm.slane %v1205_v38, 4  ;;  %v1241_v52 = vpop.permute.xlu2 %547 }
 0x125   : > { %v354_v49 = vadd.f32 %v352_v45, %v344_v44  ;;  %v392_v6 = vmul.f32 %v390_v56, %v1184_v22  ;;  %v410_v11 = vperm.slane %v323_v34, 7  ;;  %v1220_v12 = vmax.f32 %v286_v0, 0.0  ;;  %v288_v45 = vpop.f32.mrf.mxu2  ;;  %v458_v56 = vpop.permute.xlu0 %457 }
 0x126   : > { %v355_v3 = vadd.f32 %v353_v59, %v345_v58  ;;  %v373_v14 = vmul.f32 %v371_v60, %v368_v20  ;;  %v391_v17 = vperm.slane %v1205_v38, 5  ;;  %v402_v15 = vmul.f32 %v400_v63, %v1186_v23 }
 0x127   : > { %v364_v57 = vadd.f32 %v362_v50, %v354_v49  ;;  %v401_v18 = vperm.slane %v1205_v38, 6  ;;  %v1225_v19 = vmax.f32 %v315_v1, 0.0  ;;  %v383_v32 = vmul.f32 %v381_v9, %v1182_v21 }
 0x128   : > { %v365_v7 = vadd.f32 %v363_v4, %v355_v3  ;;  %v420_v33 = vperm.slane %v1220_v12, 0  ;;  %v412_v34 = vmul.f32 %v410_v11, %v408_v13  ;;  %v411_v36 = vperm.slane %v1205_v38, 7 }
 0x129   : > { %v374_v2 = vadd.f32 %v372_v55, %v364_v57  ;;  %v393_v20 = vmul.f32 %v391_v17, %v1184_v22  ;;  %v430_v40 = vperm.slane %v1220_v12, 1  ;;  %v403_v42 = vmul.f32 %v401_v18, %v1186_v23  ;;  %v317_v57 = vpop.f32.mrf.mxu3 }
 0x12a   : > { %v375_v31 = vadd.f32 %v373_v14, %v365_v7  ;;  %v421_v43 = vperm.slane %v1225_v19, 0  ;;  %v422_v21 = vmul.f32 %v420_v33, %v1189_v8  ;;  %v440_v47 = vperm.slane %v1220_v12, 2 }
 0x12b   : > { %v384_v5 = vadd.f32 %v382_v62, %v374_v2  ;;  %v413_v38 = vmul.f32 %v411_v36, %v408_v13  ;;  %v431_v49 = vperm.slane %v1225_v19, 1  ;;  %v432_v51 = vmul.f32 %v430_v40, %v1191_v24 }
 0x12c   : > { %v385_v37 = vadd.f32 %v383_v32, %v375_v31  ;;  %v450_v23 = vperm.slane %v1220_v12, 3  ;;  %v289_v53 = vadd.f32 %v288_v45, %v1201_v29  ;;  %v423_v54 = vmul.f32 %v421_v43, %v1189_v8 }
 0x12d   : > { %v394_v30 = vadd.f32 %v392_v6, %v384_v5  ;;  %v441_v55 = vperm.slane %v1225_v19, 2  ;;  %v442_v60 = vmul.f32 %v440_v47, %v1193_v25  ;;  %v460_v62 = vperm.slane %v1220_v12, 4 }
 0x12e   : > { %v395_v44 = vadd.f32 %v393_v20, %v385_v37  ;;  %v433_v63 = vmul.f32 %v431_v49, %v1191_v24  ;;  %v451_v0 = vperm.slane %v1225_v19, 3  ;;  %v452_v3 = vmul.f32 %v450_v23, %v1195_v26  ;;  %v1269_v20 = vpop.permute.xlu2 %577 }
 0x12f   : > { %v404_v41 = vadd.f32 %v402_v15, %v394_v30  ;;  %v470_v8 = vperm.slane %v1220_v12, 5  ;;  %v1252_v4 = vmax.f32 %v289_v53, 0.0  ;;  %v318_v9 = vadd.f32 %v317_v57, %v1201_v29  ;;  %v1262_v29 = vpop.permute.xlu1 %567 }
 0x130   : > { %v405_v22 = vadd.f32 %v403_v42, %v395_v44  ;;  %v443_v6 = vmul.f32 %v441_v55, %v1193_v25  ;;  %v461_v11 = vperm.slane %v1225_v19, 4  ;;  %v462_v7 = vmul.f32 %v460_v62, %v458_v56 }
 0x131   : > { %v414_v46 = vadd.f32 %v412_v34, %v404_v41  ;;  %v480_v24 = vperm.slane %v1220_v12, 6  ;;  %v453_v14 = vmul.f32 %v451_v0, %v1195_v26  ;;  %v471_v17 = vperm.slane %v1225_v19, 5  ;;  %v320_v0 = vpop.f32.mrf.mxu3 }
 0x132   : > { %v415_v58 = vadd.f32 %v413_v38, %v405_v22  ;;  %v472_v30 = vmul.f32 %v470_v8, %v1197_v27  ;;  %v490_v31 = vperm.slane %v1220_v12, 7  ;;  %v1264_v25 = vmax.f32 %v318_v9, 0.0  ;;  %v508_v12 = vpop.permute.xlu0 %507 }
 0x133   : > { %v424_v50 = vadd.f32 %v422_v21, %v414_v46  ;;  %v463_v32 = vmul.f32 %v461_v11, %v458_v56  ;;  %v500_v33 = vperm.slane %v1252_v4, 0  ;;  %v481_v37 = vperm.slane %v1225_v19, 6 }
 0x134   : > { %v425_v1 = vadd.f32 %v423_v54, %v415_v58  ;;  %v482_v26 = vmul.f32 %v480_v24, %v1199_v28  ;;  %v491_v40 = vperm.slane %v1225_v19, 7  ;;  %v510_v41 = vperm.slane %v1252_v4, 1  ;;  %v291_v19 = vpop.f32.mrf.mxu2 }
 0x135   : > { %v434_v59 = vadd.f32 %v432_v51, %v424_v50  ;;  %v473_v43 = vmul.f32 %v471_v17, %v1197_v27  ;;  %v492_v45 = vmul.f32 %v490_v31, %v1203_v35  ;;  %v501_v46 = vperm.slane %v1264_v25, 0 }
 0x136   : > { %v435_v13 = vadd.f32 %v433_v63, %v425_v1  ;;  %v502_v21 = vmul.f32 %v500_v33, %v1207_v39  ;;  %v483_v38 = vmul.f32 %v481_v37, %v1199_v28  ;;  %v520_v22 = vperm.slane %v1252_v4, 2  ;;  %v598_v9 = vpop.permute.xlu2 %597 }
 0x137   : > { %v444_v2 = vadd.f32 %v442_v60, %v434_v59  ;;  %v493_v50 = vmul.f32 %v491_v40, %v1203_v35  ;;  %v511_v51 = vperm.slane %v1264_v25, 1  ;;  %v512_v53 = vmul.f32 %v510_v41, %v508_v12  ;;  %v588_v35 = vpop.permute.xlu1 %587 }
 0x138   : > { %v445_v15 = vadd.f32 %v443_v6, %v435_v13  ;;  %v530_v54 = vperm.slane %v1252_v4, 3  ;;  %v521_v55 = vperm.slane %v1264_v25, 2  ;;  %v540_v56 = vperm.slane %v1252_v4, 4 }
 0x139   : > { %v454_v5 = vadd.f32 %v452_v3, %v444_v2  ;;  %v292_v57 = vadd.f32 %v291_v19, %v1180_v16  ;;  %v503_v58 = vmul.f32 %v501_v46, %v1207_v39  ;;  %v522_v60 = vmul.f32 %v520_v22, %v1213_v61 }
 0x13a   : > { %v455_v34 = vadd.f32 %v453_v14, %v445_v15  ;;  %v513_v62 = vmul.f32 %v511_v51, %v508_v12  ;;  %v531_v63 = vperm.slane %v1264_v25, 3  ;;  %v532_v3 = vmul.f32 %v530_v54, %v1217_v10 }
 0x13b   : > { %v464_v18 = vadd.f32 %v462_v7, %v454_v5  ;;  %v550_v8 = vperm.slane %v1252_v4, 5  ;;  %v523_v6 = vmul.f32 %v521_v55, %v1213_v61  ;;  %v541_v11 = vperm.slane %v1264_v25, 4  ;;  %v558_v5 = vpop.permute.xlu0 %557 }
 0x13c   : > { %v465_v42 = vadd.f32 %v463_v32, %v455_v34  ;;  %v542_v39 = vmul.f32 %v540_v56, %v1236_v48  ;;  %v560_v13 = vperm.slane %v1252_v4, 6  ;;  %v1294_v14 = vmax.f32 %v292_v57, 0.0 }
 0x13d   : > { %v474_v36 = vadd.f32 %v472_v30, %v464_v18  ;;  %v321_v17 = vadd.f32 %v320_v0, %v1180_v16  ;;  %v533_v15 = vmul.f32 %v531_v63, %v1217_v10  ;;  %v551_v18 = vperm.slane %v1264_v25, 5 }
 0x13e   : > { %v475_v47 = vadd.f32 %v473_v43, %v465_v42  ;;  %v552_v61 = vmul.f32 %v550_v8, %v1241_v52  ;;  %v570_v32 = vperm.slane %v1252_v4, 7  ;;  %v543_v33 = vmul.f32 %v541_v11, %v1236_v48 }
 0x13f   : > { %v484_v44 = vadd.f32 %v482_v26, %v474_v36  ;;  %v561_v34 = vperm.slane %v1264_v25, 6  ;;  %v562_v36 = vmul.f32 %v560_v13, %v558_v5  ;;  %v1303_v40 = vmax.f32 %v321_v17, 0.0 }
 0x140   : > { %v485_v23 = vadd.f32 %v483_v38, %v475_v47  ;;  %v580_v16 = vperm.slane %v1294_v14, 0  ;;  %v553_v10 = vmul.f32 %v551_v18, %v1241_v52  ;;  %v571_v41 = vperm.slane %v1264_v25, 7 }
 0x141   : > { %v494_v49 = vadd.f32 %v492_v45, %v484_v44  ;;  %v572_v43 = vmul.f32 %v570_v32, %v1262_v29  ;;  %v590_v4 = vperm.slane %v1294_v14, 1  ;;  %v563_v48 = vmul.f32 %v561_v34, %v558_v5  ;;  %v618_v44 = vpop.permute.xlu1 %617 }
 0x142   : > { %v495_v28 = vadd.f32 %v493_v50, %v485_v23  ;;  %v600_v45 = vperm.slane %v1294_v14, 2  ;;  %v581_v47 = vperm.slane %v1303_v40, 0  ;;  %v582_v38 = vmul.f32 %v580_v16, %v1269_v20 }
 0x143   : > { %v504_v27 = vadd.f32 %v502_v21, %v494_v49  ;;  %v573_v52 = vmul.f32 %v571_v41, %v1262_v29  ;;  %v628_v49 = vpop.permute.xlu2 %627  ;;  %v591_v25 = vperm.slane %v1303_v40, 1  ;;  %v592_v50 = vmul.f32 %v590_v4, %v588_v35  ;;  %v608_v23 = vpop.permute.xlu0 %607 }
 0x144   : > { %v505_v1 = vadd.f32 %v503_v58, %v495_v28  ;;  %v610_v51 = vperm.slane %v1294_v14, 3  ;;  %v583_v55 = vmul.f32 %v581_v47, %v1269_v20  ;;  %v602_v57 = vmul.f32 %v600_v45, %v598_v9 }
 0x145   : > { %v514_v59 = vadd.f32 %v512_v53, %v504_v27  ;;  %v601_v27 = vperm.slane %v1303_v40, 2  ;;  %v620_v53 = vperm.slane %v1294_v14, 4  ;;  %v593_v28 = vmul.f32 %v591_v25, %v588_v35 }
 0x146   : > { %v515_v7 = vadd.f32 %v513_v62, %v505_v1  ;;  %v611_v29 = vperm.slane %v1303_v40, 3  ;;  %v630_v62 = vperm.slane %v1294_v14, 5  ;;  %v621_v0 = vperm.slane %v1303_v40, 4 }
 0x147   : > { %v524_v2 = vadd.f32 %v522_v60, %v514_v59  ;;  %v612_v60 = vmul.f32 %v610_v51, %v608_v23  ;;  %v603_v63 = vmul.f32 %v601_v27, %v598_v9  ;;  %v640_v8 = vperm.slane %v1294_v14, 6 }
 0x148   : > { %v525_v30 = vadd.f32 %v523_v6, %v515_v7  ;;  %v613_v6 = vmul.f32 %v611_v29, %v608_v23  ;;  %v650_v20 = vperm.slane %v1294_v14, 7  ;;  %v631_v13 = vperm.slane %v1303_v40, 5 }
 0x149   : > { %v534_v24 = vadd.f32 %v532_v3, %v524_v2  ;;  %v622_v3 = vmul.f32 %v620_v53, %v618_v44  ;;  %v638_v11 = vpop.permute.xlu1 %637  ;;  %v632_v5 = vmul.f32 %v630_v62, %v628_v49  ;;  %v623_v7 = vmul.f32 %v621_v0, %v618_v44 }
 0x14a   : > { %v535_v37 = vadd.f32 %v533_v15, %v525_v30  ;;  %v641_v15 = vperm.slane %v1303_v40, 6  ;;  %v642_v18 = vmul.f32 %v640_v8, %v638_v11  ;;  %v651_v30 = vperm.slane %v1303_v40, 7 }
 0x14b   : > { %v544_v31 = vadd.f32 %v542_v39, %v534_v24  ;;  %v648_v24 = vpop.permute.xlu2 %647  ;;  %v633_v32 = vmul.f32 %v631_v13, %v628_v49  ;;  %v689_v25 = vlaneseq }
 0x14c   : > { %v545_v12 = vadd.f32 %v543_v33, %v535_v37  ;;  %v643_v34 = vmul.f32 %v641_v15, %v638_v11  ;;  %v660_v37 = vpop.permute.xlu0 %659 }
 0x14d   : > { %v554_v26 = vadd.f32 %v552_v61, %v544_v31  ;;  %v652_v61 = vmul.f32 %v650_v20, %v648_v24  ;;  %vm691_vm2 = vcmp.lt.s32.totalorder %v689_v25, 256 }
 0x14e   : > { %v555_v46 = vadd.f32 %v553_v10, %v545_v12 }
 0x14f   : > { %v564_v42 = vadd.f32 %v562_v36, %v554_v26  ;;  %v653_v26 = vmul.f32 %v651_v30, %v648_v24 }
 0x150   : > { %v565_v22 = vadd.f32 %v563_v48, %v555_v46 }
 0x151   : > { %v574_v21 = vadd.f32 %v572_v43, %v564_v42  ;;  %v679_v49 = vpop.permute.xlu1 %678 }
 0x152   : > { %v575_v54 = vadd.f32 %v573_v52, %v565_v22 }
 0x153   : > { %v584_v19 = vadd.f32 %v582_v38, %v574_v21 }
 0x154   : > { %v585_v58 = vadd.f32 %v583_v55, %v575_v54 }
 0x155   : > { %v594_v56 = vadd.f32 %v592_v50, %v584_v19 }
 0x156   : > { %v595_v1 = vadd.f32 %v593_v28, %v585_v58 }
 0x157   : > { %v604_v59 = vadd.f32 %v602_v57, %v594_v56 }
 0x158   : > { %v605_v35 = vadd.f32 %v603_v63, %v595_v1 }
 0x159   : > { %v614_v2 = vadd.f32 %v612_v60, %v604_v59 }
 0x15a   : > { %v615_v17 = vadd.f32 %v613_v6, %v605_v35 }
 0x15b   : > { %v624_v39 = vadd.f32 %v622_v3, %v614_v2 }
 0x15c   : > { %v625_v31 = vadd.f32 %v623_v7, %v615_v17 }
 0x15d   : > { %v634_v9 = vadd.f32 %v632_v5, %v624_v39 }
 0x15e   : > { %v635_v14 = vadd.f32 %v633_v32, %v625_v31 }
 0x15f   : > { %v644_v33 = vadd.f32 %v642_v18, %v634_v9 }
 0x160   : > { %v645_v16 = vadd.f32 %v643_v34, %v635_v14 }
 0x161   : > { %v654_v36 = vadd.f32 %v652_v61, %v644_v33 }
 0x162   : > { %v655_v41 = vadd.f32 %v653_v26, %v645_v16 }
 0x163   : > { %v656_v10 = vmax.f32 %v654_v36, 0.0 }
 0x164   : > { %v657_v42 = vmax.f32 %v655_v41, 0.0 }
 0x165   : > { %v662_v12 = vmul.f32 %v660_v37, %v656_v10 }
 0x166   : > { %v663_v4 = vmul.f32 %v660_v37, %v657_v42 }
 0x167   : > { %v664_v43 = vrot.slane %v662_v12, 4 }
 0x168   : > { %v670_v40 = vrot.slane %v663_v4, 4 }
 0x169   : > { %v665_v48 = vadd.f32 %v664_v43, %v662_v12 }
 0x16a   : > { %v671_v45 = vadd.f32 %v670_v40, %v663_v4 }
 0x16b   : > { %v666_v44 = vrot.slane %v665_v48, 2 }
 0x16c   : > { %v672_v21 = vrot.slane %v671_v45, 2 }
 0x16d   : > { %v667_v46 = vadd.f32 %v666_v44, %v665_v48 }
 0x16e   : > { %v673_v38 = vadd.f32 %v672_v21, %v671_v45 }
 0x16f   : > { %v668_v47 = vrot.slane %v667_v46, 1 }
 0x170   : > { %v674_v52 = vrot.slane %v673_v38, 1 }
 0x171   : > { %v669_v22 = vadd.f32 %v668_v47, %v667_v46 }
 0x172   : > { %v675_v19 = vadd.f32 %v674_v52, %v673_v38 }
 0x173   : > { %v681_v51 = vadd.f32 %v679_v49, %v669_v22 }
 0x174   : > { %v682_v50 = vadd.f32 %v679_v49, %v675_v19 }
 0x175   : > { %701 = sbr.rel (!%p1073_p5) target bundleno = 407 (0x197), region = 32 }
 0x176   : > { %v685_v23 = vrot.slane %v682_v50, 7 }
 0x178   : > { %v687_v27 = vsel %vm686_vm1, %v681_v51, %v685_v23 }
 0x179   : > { %693 = vst.msk [vmem:[%s149_s25] sm:$0x3] %vm691_vm2, %v687_v27 }
 0x17a   : > { %s1400_s27 = smov (!%p704_p11, %s703_s27), 2 }
 0x17b   : > { %s706_s28 = ssub.s32 2, %s1400_s27 }
 0x17c   : > { %s707_s29 = sshll.u32 %s706_s28, 4 }
 0x17d   : > { %708 = vsyncadd %s1331_s26, %s707_s29  ;;  %p791_p12 = scmp.ne.s32.totalorder %s1400_s27, 0  ;;  %s710_s19 = scalar_lea.hbm %s1392_s2, %s1134_s7 }
 0x17e   : > { %s711_s4 = sshll.u32 %s1400_s27, 4  ;;  %s1346_s5 = sshll.u32 %s149_s25, 4  ;;  %s713_s5 = int_to_ptr.vmem [resolvable:$true] %s1346_s5 }
 0x17f   : > { %s1349_s6 = sshll.u32 %s710_s19, 4  ;;  %s911_s8 = sshra.s32 %s713_s5, 4  ;;  %s715_s6 = int_to_ptr.hbm [resolvable:$true] %s1349_s6  ;;  %s912_s8 = int_to_ptr.vmem [resolvable:$true] %s911_s8 }
 0x180   : > { %s913_s13 = sshrl.u32 %s711_s4, 4  ;;  %s1020_s7 = smov [#allocation2]  }
 0x181   : > { %s918_s14 = scalar_lea.vmem %s912_s8, %s913_s13  ;;  %s922_s16 = scalar_lea.vmem %s1020_s7, 4 }
 0x182   : > { %p919_p13 = scmp.ne.s32.totalorder %s912_s8, %s918_s14  ;;  %p924_p2 = scmp.lt.s32.totalorder %s922_s16, %s918_s14 }
 0x184   : > { %p920_p0 = pnand %p919_p13, %p791_p12 }
 0x186   : > { %p921_p1 = pneg %p920_p0 }
 0x188   : > { %p926_p3 = pnand %p924_p2, %p921_p1 }
 0x18a   : > { %929 = shalt.err (!%p926_p3)
}
 0x18b   : > { %s930_s17 = sshra.s32 %s715_s6, 4  ;;  %s941_s24 = scalar_lea.hbm %s1392_s2, 3  ;;  %s931_s17 = int_to_ptr.hbm [resolvable:$true] %s930_s17 }
 0x18c   : > { %s937_s21 = scalar_lea.hbm %s931_s17, %s913_s13  ;;  %p942_p8 = scmp.lt.s32.totalorder %s931_s17, %s1392_s2 }
 0x18d   : > { %p938_p4 = scmp.ne.s32.totalorder %s931_s17, %s937_s21  ;;  %p943_p9 = scmp.lt.s32.totalorder %s941_s24, %s937_s21 }
 0x18f   : > { %p939_p5 = pnand %p938_p4, %p791_p12  ;;  %p944_p10 = por %p943_p9, %p942_p8 }
 0x191   : > { %p940_p7 = pneg %p939_p5 }
 0x193   : > { %p945_p11 = pnand %p944_p10, %p940_p7 }
 0x195   : > { %948 = shalt.err (!%p945_p11)
}
 0x196   : > { %717 = dma.vmem_to_hbm [thread:$0]  (%p791_p12), %s713_s5, %s711_s4, %s715_s6, %s1331_s26  }
 0x197 PF: > { %p803_p13 = scmp.ge.s32.totalorder %s984_s12, 2  ;;  %s726_s29 = sand.u32 1, %s972_s9  }
 0x198   : > { %s727_s30 = scalar_lea.sflag [#allocation3], %s726_s29 }
 0x199   : > { %p800_p0 = pnand %p803_p13, %p1077_p6 }
 0x19b   : > { %p801_p1 = pneg %p800_p0 }
 0x19d   : > { %967 = dma.done.wait (%p801_p1), %s727_s30, 32  }
 0x19e   : > { %969 = vsyncadd (%p801_p1), %s727_s30, 4294967264  ;;  %p12_p2 = scmp.ge.s32.totalorder %s1059_s15, 4   ;;  %s1395_s9 = smov %s976_s10 }
 0x19f   : > { %s1396_s10 = smov %s980_s11  ;;  %s1397_s11 = smov %s1071_s18 }
 0x1a0   : > { %s1398_s12 = smov %s1059_s15  ;;  %14 = sbr.rel (!%p12_p2) target bundleno = 3 (0x3), region = 63 }
 0x1a5   :  { %733 = vsyncpa [#allocation3], 1 }
 0x1a6   :  { %735 = vsyncpa [#allocation3 + $0x1], 1 }

</bundles_post_ra>
